<compile_context>
chip_gen: v5e
topology: v5e:2x2
jax: 0.10.0
libtpu: 0.0.40
codegen_flags: <defaults>
</compile_context>

<pallas_src>
import math

import jax
import jax.numpy as jnp
from jax.experimental import pallas as pl
from jax.experimental.pallas import tpu as pltpu


def _make_ghost_kernel(HW, W, bblk, cinit, oup):
    """Kernel factory. Shapes (per grid step):
       x_ref    : (Bblk, Cin, HW)   input images, spatial flattened on lanes
       w1_ref   : (Cinit, Cin)      1x1 conv weight with BN1 scale folded in
       b1_ref   : (Cinit, 1)        folded BN1 bias
       wdw_ref  : (Cinit, 9)        3x3 depthwise weights (BN2 scale folded),
                                    column k = 3*ky + kx
       b2_ref   : (Cinit, 1)        folded BN2 bias
       masks_ref: (4, HW)           0/1 validity masks [left, right, up, down]
       out_ref  : (Bblk, oup, HW)
    """
    need_cheap = oup > cinit  # oup == cinit => x2 never used (skip cheap op)

    def kernel(x_ref, w1_ref, b1_ref, wdw_ref, b2_ref, masks_ref, out_ref):
        w1 = w1_ref[...]
        b1 = b1_ref[...]
        if need_cheap:
            wdw = wdw_ref[...]
            b2 = b2_ref[...]
            ml = masks_ref[0:1, :]   # w-1 >= 0
            mr = masks_ref[1:2, :]   # w+1 <= W-1
            mu = masks_ref[2:3, :]   # h-1 >= 0
            md = masks_ref[3:4, :]   # h+1 <= H-1

        for b in range(bblk):                          # static unroll over the batch block
            x = x_ref[b]                               # (Cin, HW)

            # ---- primary conv: 1x1 conv over channels on the MXU ----
            x1 = jnp.dot(w1, x, preferred_element_type=jnp.float32)
            x1 = jnp.maximum(x1 + b1, 0.0)             # (Cinit, HW)

            if need_cheap:
                # ---- cheap operation: depthwise 3x3, stride 1, zero pad 1 ----
                # Column-masked +/-1 lane-shifted copies (built once, reused by
                # all three kernel rows; column masks commute with the +/-W roll).
                xl = ml * pltpu.roll(x1, 1, 1)         # x1[p-1], zeroed at col 0
                xr = mr * pltpu.roll(x1, HW - 1, 1)    # x1[p+1], zeroed at col W-1

                # dy = 0 row
                x2 = wdw[:, 3:4] * xl + wdw[:, 4:5] * x1 + wdw[:, 5:6] * xr
                # dy = -1 row: shift by +W (x1[p-W+dx]), single row mask
                up = (wdw[:, 0:1] * pltpu.roll(xl, W, 1)
                      + wdw[:, 1:2] * pltpu.roll(x1, W, 1)
                      + wdw[:, 2:3] * pltpu.roll(xr, W, 1))
                # dy = +1 row: shift by -W (x1[p+W+dx]), single row mask
                dn = (wdw[:, 6:7] * pltpu.roll(xl, HW - W, 1)
                      + wdw[:, 7:8] * pltpu.roll(x1, HW - W, 1)
                      + wdw[:, 8:9] * pltpu.roll(xr, HW - W, 1))
                x2 = x2 + mu * up + md * dn
                x2 = jnp.maximum(x2 + b2, 0.0)         # (Cinit, HW)

                # ---- out = cat([x1, x2], channel)[:oup]: single full-tile store ----
                combined = jnp.concatenate([x1, x2[:oup - cinit, :]], axis=0)
            else:
                combined = x1[:oup, :]
            out_ref[b] = combined.astype(out_ref.dtype)

    return kernel


def ghost_module_forward(x_nchw, w1, bn1_scale, bn1_bias, wdw, bn2_scale,
                         bn2_bias, oup):
    """GhostModule forward (eval mode, BN folded to scale/bias).

    x_nchw : (N, Cin, H, W) float32
    w1     : (Cinit, Cin)          primary 1x1 conv weight (torch weight squeezed)
    bn1_*  : (Cinit,)              folded BN1 scale / bias
    wdw    : (new_channels, 3, 3)  depthwise 3x3 weight (torch weight squeezed)
    bn2_*  : (new_channels,)       folded BN2 scale / bias
    Returns (N, oup, H, W) float32.
    """
    N, Cin, H, W = x_nchw.shape
    Cinit = w1.shape[0]
    new_channels = wdw.shape[0]
    if new_channels != Cinit:
        raise NotImplementedError("only ratio=2 (channel multiplier 1) supported")
    if not (Cinit <= oup <= Cinit + new_channels):
        raise ValueError("inconsistent oup / init_channels")

    # Fold BN scales into the conv weights (one-time O(params) prep).
    w1_f = (w1 * bn1_scale[:, None]).astype(jnp.float32)
    b1 = bn1_bias.reshape(Cinit, 1).astype(jnp.float32)
    wdw_f = (wdw * bn2_scale[:, None, None]).reshape(Cinit, 9).astype(jnp.float32)
    b2 = bn2_bias.reshape(Cinit, 1).astype(jnp.float32)

    HW = H * W

    # Precomputed 0/1 boundary-validity masks (no in-kernel int div/mod).
    colv = jnp.arange(HW, dtype=jnp.int32) % W
    rowv = jnp.arange(HW, dtype=jnp.int32) // W
    masks = jnp.stack(
        [colv >= 1, colv <= W - 2, rowv >= 1, rowv <= H - 2], axis=0
    ).astype(jnp.float32)                                # (4, HW)

    # Batch folding: amortize the ~0.35us per-grid-step overhead with ~1 MB
    # blocks, but cap the in-kernel unroll and keep >=2 parallel steps when
    # N > 1 (v7x has two TensorCores per chip).
    bytes_per_image = (Cin + oup) * HW * 4
    bblk = max(1, min(N, (1 << 20) // max(bytes_per_image, 1), 8))
    if bblk >= N and N > 1:
        bblk = (N + 1) // 2
    n_blocks = -(-N // bblk)
    n_pad = n_blocks * bblk

    x_flat = x_nchw.reshape(N, Cin, HW)                  # free reshape, no transpose
    if n_pad != N:
        x_flat = jnp.pad(x_flat, ((0, n_pad - N), (0, 0), (0, 0)))

    # Generation-aware VMEM budget (v7x: 64 MiB/TC, v5e/v6e: 128 MiB).
    try:
        vmem_cap = pltpu.get_tpu_info().vmem_capacity_bytes
        vmem_limit = int(min(vmem_cap * 3 // 4, 96 * 1024 * 1024))
    except Exception:
        vmem_limit = 32 * 1024 * 1024

    out_flat = pl.pallas_call(
        _make_ghost_kernel(HW, W, bblk, Cinit, oup),
        out_shape=jax.ShapeDtypeStruct((n_pad, oup, HW), jnp.float32),
        grid_spec=pltpu.PrefetchScalarGridSpec(
            num_scalar_prefetch=0,
            grid=(n_blocks,),
            in_specs=[
                pl.BlockSpec((bblk, Cin, HW), lambda n: (n, 0, 0)),
                pl.BlockSpec((Cinit, Cin), lambda n: (0, 0)),
                pl.BlockSpec((Cinit, 1), lambda n: (0, 0)),
                pl.BlockSpec((Cinit, 9), lambda n: (0, 0)),
                pl.BlockSpec((Cinit, 1), lambda n: (0, 0)),
                pl.BlockSpec((4, HW), lambda n: (0, 0)),
            ],
            out_specs=pl.BlockSpec((bblk, oup, HW), lambda n: (n, 0, 0)),
        ),
        compiler_params=pltpu.CompilerParams(
            dimension_semantics=("parallel",),
            vmem_limit_bytes=vmem_limit,
        ),
    )(x_flat, w1_f, b1, wdw_f, b2, masks)

    return out_flat[:N].reshape(N, oup, H, W)            # free reshape back to NCHW


def _fold_bn(gamma, beta, mean, var, eps=1e-5):
    scale = gamma / jnp.sqrt(var + eps)
    bias = beta - mean * scale
    return scale, bias


def _reference_forward(x_nchw, w1, s1, b1, wdw, s2, b2, oup):
    """Plain-JAX reference (NCHW, mirrors the PyTorch module)."""
    x1 = jnp.einsum('nchw,kc->nkhw', x_nchw, w1)
    x1 = x1 * s1[None, :, None, None] + b1[None, :, None, None]
    x1 = jnp.maximum(x1, 0.0)
    H, W = x_nchw.shape[2], x_nchw.shape[3]
    xp = jnp.pad(x1, ((0, 0), (0, 0), (1, 1), (1, 1)))
    x2 = jnp.zeros_like(x1)
    for i in range(3):
        for j in range(3):
            x2 = x2 + xp[:, :, i:i + H, j:j + W] * wdw[:, i, j][None, :, None, None]
    x2 = x2 * s2[None, :, None, None] + b2[None, :, None, None]
    x2 = jnp.maximum(x2, 0.0)
    return jnp.concatenate([x1, x2], axis=1)[:, :oup]


def _run_case(key, N, Cin, H, W, oup, ratio=2):
    Cinit = math.ceil(oup / ratio)
    new_channels = Cinit * (ratio - 1)

    k = jax.random.split(key, 8)
    x = jax.random.normal(k[0], (N, Cin, H, W), dtype=jnp.float32)

    # primary 1x1 conv weight: torch layout (Cinit, Cin, 1, 1) -> (Cinit, Cin)
    w1 = jax.random.normal(k[1], (Cinit, Cin), dtype=jnp.float32) * 0.2
    # depthwise 3x3 weight: torch layout (new_channels, 1, 3, 3) -> (new_channels, 3, 3)
    wdw = jax.random.normal(k[2], (new_channels, 3, 3), dtype=jnp.float32) * 0.2

    # BatchNorm parameters (eval-mode running stats), folded to scale/bias.
    g1 = 1.0 + 0.1 * jax.random.normal(k[3], (Cinit,), dtype=jnp.float32)
    be1 = 0.1 * jax.random.normal(k[4], (Cinit,), dtype=jnp.float32)
    m1 = 0.1 * jax.random.normal(k[5], (Cinit,), dtype=jnp.float32)
    v1 = jnp.abs(1.0 + 0.1 * jax.random.normal(k[6], (Cinit,), dtype=jnp.float32))
    s1, b1 = _fold_bn(g1, be1, m1, v1)

    g2 = jnp.ones((new_channels,), jnp.float32)
    be2 = jnp.zeros((new_channels,), jnp.float32)
    m2 = jnp.zeros((new_channels,), jnp.float32)
    v2 = jnp.abs(1.0 + 0.1 * jax.random.normal(k[7], (new_channels,), dtype=jnp.float32))
    s2, b2 = _fold_bn(g2, be2, m2, v2)

    out = ghost_module_forward(x, w1, s1, b1, wdw, s2, b2, oup)
    out = jax.block_until_ready(out)

    ref = _reference_forward(x, w1, s1, b1, wdw, s2, b2, oup)
    assert out.shape == (N, oup, H, W), out.shape
    err = float(jnp.max(jnp.abs(out - ref)))
    assert jnp.allclose(out, ref, atol=1e-4, rtol=1e-4), err


if __name__ == "__main__":
    key = jax.random.PRNGKey(0)
    k1, k2 = jax.random.split(key)
    # GhostModule(inp=4, oup=8), N=2, 16x16: two parallel grid steps.
    _run_case(k1, N=2, Cin=4, H=16, W=16, oup=8)
    # Batch padding + Bblk>1 unroll + oup not equal to 2*Cinit (partial x2 slab).
    _run_case(k2, N=5, Cin=6, H=8, W=16, oup=9)
    print("KERNEL_OK")
</pallas_src>

<mosaic_0001>
module attributes {stable_mosaic.version = 11 : i64} {
  func.func @kernel(%arg0: i32, %arg1: memref<1x4x256xf32, #tpu.memory_space<vmem>>, %arg2: memref<4x4xf32, #tpu.memory_space<vmem>>, %arg3: memref<4x1xf32, #tpu.memory_space<vmem>>, %arg4: memref<4x9xf32, #tpu.memory_space<vmem>>, %arg5: memref<4x1xf32, #tpu.memory_space<vmem>>, %arg6: memref<4x256xf32, #tpu.memory_space<vmem>>, %arg7: memref<1x8x256xf32, #tpu.memory_space<vmem>>) attributes {dimension_semantics = [#tpu.dimension_semantics<parallel>], iteration_bounds = array<i64: 2>, scalar_prefetch = 0 : i64, scratch_operands = 0 : i64, tpu.core_type = #tpu.core_type<tc>, window_params = [{transform_indices = @transform_0, window_bounds = array<i64: 1, 4, 256>}, {pipeline_mode = #tpu.pipeline_mode<synchronous>, transform_indices = @transform_1, window_bounds = array<i64: 4, 4>}, {pipeline_mode = #tpu.pipeline_mode<synchronous>, transform_indices = @transform_2, window_bounds = array<i64: 4, 1>}, {pipeline_mode = #tpu.pipeline_mode<synchronous>, transform_indices = @transform_3, window_bounds = array<i64: 4, 9>}, {pipeline_mode = #tpu.pipeline_mode<synchronous>, transform_indices = @transform_4, window_bounds = array<i64: 4, 1>}, {pipeline_mode = #tpu.pipeline_mode<synchronous>, transform_indices = @transform_5, window_bounds = array<i64: 4, 256>}, {transform_indices = @transform_6, window_bounds = array<i64: 1, 8, 256>}]} {
    %c0 = arith.constant 0 : index
    %c0_0 = arith.constant 0 : index
    %0 = vector.load %arg2[%c0, %c0_0] : memref<4x4xf32, #tpu.memory_space<vmem>>, vector<4x4xf32>
    %c0_1 = arith.constant 0 : index
    %c0_2 = arith.constant 0 : index
    %1 = vector.load %arg3[%c0_1, %c0_2] : memref<4x1xf32, #tpu.memory_space<vmem>>, vector<4x1xf32>
    %c0_3 = arith.constant 0 : index
    %c0_4 = arith.constant 0 : index
    %2 = vector.load %arg4[%c0_3, %c0_4] : memref<4x9xf32, #tpu.memory_space<vmem>>, vector<4x9xf32>
    %c0_5 = arith.constant 0 : index
    %c0_6 = arith.constant 0 : index
    %3 = vector.load %arg5[%c0_5, %c0_6] : memref<4x1xf32, #tpu.memory_space<vmem>>, vector<4x1xf32>
    %c0_7 = arith.constant 0 : index
    %c0_8 = arith.constant 0 : index
    %4 = vector.load %arg6[%c0_7, %c0_8] : memref<4x256xf32, #tpu.memory_space<vmem>>, vector<1x256xf32>
    %c1 = arith.constant 1 : index
    %c0_9 = arith.constant 0 : index
    %5 = vector.load %arg6[%c1, %c0_9] : memref<4x256xf32, #tpu.memory_space<vmem>>, vector<1x256xf32>
    %c2 = arith.constant 2 : index
    %c0_10 = arith.constant 0 : index
    %6 = vector.load %arg6[%c2, %c0_10] : memref<4x256xf32, #tpu.memory_space<vmem>>, vector<1x256xf32>
    %c3 = arith.constant 3 : index
    %c0_11 = arith.constant 0 : index
    %7 = vector.load %arg6[%c3, %c0_11] : memref<4x256xf32, #tpu.memory_space<vmem>>, vector<1x256xf32>
    %c0_12 = arith.constant 0 : index
    %c0_13 = arith.constant 0 : index
    %c0_14 = arith.constant 0 : index
    %8 = vector.load %arg1[%c0_12, %c0_13, %c0_14] : memref<1x4x256xf32, #tpu.memory_space<vmem>>, vector<1x4x256xf32>
    %9 = vector.shape_cast %8 : vector<1x4x256xf32> to vector<4x256xf32>
    %cst = arith.constant dense<0.000000e+00> : vector<4x256xf32>
    %10 = tpu.matmul %0, %9, %cst {dimension_numbers = #tpu.dot_dimension_numbers<[1], [0], [0], [1], [0, 0, 1, 1], [], []>} : vector<4x4xf32>, vector<4x256xf32>, vector<4x256xf32> -> vector<4x256xf32>
    %11 = vector.broadcast %1 : vector<4x1xf32> to vector<4x256xf32>
    %12 = arith.addf %10, %11 : vector<4x256xf32>
    %cst_15 = arith.constant 0.000000e+00 : f32
    %13 = vector.broadcast %cst_15 : f32 to vector<4x256xf32>
    %14 = arith.maximumf %12, %13 : vector<4x256xf32>
    %c1_i32 = arith.constant 1 : i32
    %15 = tpu.dynamic_rotate %14 by %c1_i32 dim 1 : vector<4x256xf32>, i32 -> vector<4x256xf32>
    %16 = vector.broadcast %4 : vector<1x256xf32> to vector<4x256xf32>
    %17 = arith.mulf %16, %15 : vector<4x256xf32>
    %c255_i32 = arith.constant 255 : i32
    %18 = tpu.dynamic_rotate %14 by %c255_i32 dim 1 : vector<4x256xf32>, i32 -> vector<4x256xf32>
    %19 = vector.broadcast %5 : vector<1x256xf32> to vector<4x256xf32>
    %20 = arith.mulf %19, %18 : vector<4x256xf32>
    %21 = vector.extract_strided_slice %2 {offsets = [0, 3], sizes = [4, 1], strides = [1, 1]} : vector<4x9xf32> to vector<4x1xf32>
    %22 = vector.broadcast %21 : vector<4x1xf32> to vector<4x256xf32>
    %23 = arith.mulf %22, %17 : vector<4x256xf32>
    %24 = vector.extract_strided_slice %2 {offsets = [0, 4], sizes = [4, 1], strides = [1, 1]} : vector<4x9xf32> to vector<4x1xf32>
    %25 = vector.broadcast %24 : vector<4x1xf32> to vector<4x256xf32>
    %26 = arith.mulf %25, %14 : vector<4x256xf32>
    %27 = arith.addf %23, %26 : vector<4x256xf32>
    %28 = vector.extract_strided_slice %2 {offsets = [0, 5], sizes = [4, 1], strides = [1, 1]} : vector<4x9xf32> to vector<4x1xf32>
    %29 = vector.broadcast %28 : vector<4x1xf32> to vector<4x256xf32>
    %30 = arith.mulf %29, %20 : vector<4x256xf32>
    %31 = arith.addf %27, %30 : vector<4x256xf32>
    %32 = vector.extract_strided_slice %2 {offsets = [0, 0], sizes = [4, 1], strides = [1, 1]} : vector<4x9xf32> to vector<4x1xf32>
    %c16_i32 = arith.constant 16 : i32
    %33 = tpu.dynamic_rotate %17 by %c16_i32 dim 1 : vector<4x256xf32>, i32 -> vector<4x256xf32>
    %34 = vector.broadcast %32 : vector<4x1xf32> to vector<4x256xf32>
    %35 = arith.mulf %34, %33 : vector<4x256xf32>
    %36 = vector.extract_strided_slice %2 {offsets = [0, 1], sizes = [4, 1], strides = [1, 1]} : vector<4x9xf32> to vector<4x1xf32>
    %c16_i32_16 = arith.constant 16 : i32
    %37 = tpu.dynamic_rotate %14 by %c16_i32_16 dim 1 : vector<4x256xf32>, i32 -> vector<4x256xf32>
    %38 = vector.broadcast %36 : vector<4x1xf32> to vector<4x256xf32>
    %39 = arith.mulf %38, %37 : vector<4x256xf32>
    %40 = arith.addf %35, %39 : vector<4x256xf32>
    %41 = vector.extract_strided_slice %2 {offsets = [0, 2], sizes = [4, 1], strides = [1, 1]} : vector<4x9xf32> to vector<4x1xf32>
    %c16_i32_17 = arith.constant 16 : i32
    %42 = tpu.dynamic_rotate %20 by %c16_i32_17 dim 1 : vector<4x256xf32>, i32 -> vector<4x256xf32>
    %43 = vector.broadcast %41 : vector<4x1xf32> to vector<4x256xf32>
    %44 = arith.mulf %43, %42 : vector<4x256xf32>
    %45 = arith.addf %40, %44 : vector<4x256xf32>
    %46 = vector.extract_strided_slice %2 {offsets = [0, 6], sizes = [4, 1], strides = [1, 1]} : vector<4x9xf32> to vector<4x1xf32>
    %c240_i32 = arith.constant 240 : i32
    %47 = tpu.dynamic_rotate %17 by %c240_i32 dim 1 : vector<4x256xf32>, i32 -> vector<4x256xf32>
    %48 = vector.broadcast %46 : vector<4x1xf32> to vector<4x256xf32>
    %49 = arith.mulf %48, %47 : vector<4x256xf32>
    %50 = vector.extract_strided_slice %2 {offsets = [0, 7], sizes = [4, 1], strides = [1, 1]} : vector<4x9xf32> to vector<4x1xf32>
    %c240_i32_18 = arith.constant 240 : i32
    %51 = tpu.dynamic_rotate %14 by %c240_i32_18 dim 1 : vector<4x256xf32>, i32 -> vector<4x256xf32>
    %52 = vector.broadcast %50 : vector<4x1xf32> to vector<4x256xf32>
    %53 = arith.mulf %52, %51 : vector<4x256xf32>
    %54 = arith.addf %49, %53 : vector<4x256xf32>
    %55 = vector.extract_strided_slice %2 {offsets = [0, 8], sizes = [4, 1], strides = [1, 1]} : vector<4x9xf32> to vector<4x1xf32>
    %c240_i32_19 = arith.constant 240 : i32
    %56 = tpu.dynamic_rotate %20 by %c240_i32_19 dim 1 : vector<4x256xf32>, i32 -> vector<4x256xf32>
    %57 = vector.broadcast %55 : vector<4x1xf32> to vector<4x256xf32>
    %58 = arith.mulf %57, %56 : vector<4x256xf32>
    %59 = arith.addf %54, %58 : vector<4x256xf32>
    %60 = vector.broadcast %6 : vector<1x256xf32> to vector<4x256xf32>
    %61 = arith.mulf %60, %45 : vector<4x256xf32>
    %62 = arith.addf %31, %61 : vector<4x256xf32>
    %63 = vector.broadcast %7 : vector<1x256xf32> to vector<4x256xf32>
    %64 = arith.mulf %63, %59 : vector<4x256xf32>
    %65 = arith.addf %62, %64 : vector<4x256xf32>
    %66 = vector.broadcast %3 : vector<4x1xf32> to vector<4x256xf32>
    %67 = arith.addf %65, %66 : vector<4x256xf32>
    %cst_20 = arith.constant 0.000000e+00 : f32
    %68 = vector.broadcast %cst_20 : f32 to vector<4x256xf32>
    %69 = arith.maximumf %67, %68 : vector<4x256xf32>
    %70 = tpu.concatenate %14, %69 in 0 : vector<4x256xf32>, vector<4x256xf32> -> vector<8x256xf32>
    %c0_21 = arith.constant 0 : index
    %c0_22 = arith.constant 0 : index
    %c0_23 = arith.constant 0 : index
    %71 = vector.load %arg7[%c0_21, %c0_22, %c0_23] : memref<1x8x256xf32, #tpu.memory_space<vmem>>, vector<1x8x256xf32>
    %72 = vector.shape_cast %71 : vector<1x8x256xf32> to vector<8x256xf32>
    %73 = vector.shape_cast %70 : vector<8x256xf32> to vector<1x8x256xf32>
    tpu.vector_store %arg7[%c0_21, %c0_22, %c0_23], %73 {strides = array<i32>} : memref<1x8x256xf32, #tpu.memory_space<vmem>>, vector<1x8x256xf32>,
    return
  }
  func.func @transform_0(%arg0: i32) -> (i32, i32, i32) {
    %c0_i32 = arith.constant 0 : i32
    %c0_i32_0 = arith.constant 0 : i32
    %c0_i32_1 = arith.constant 0 : i32
    return %arg0, %c0_i32, %c0_i32_0 : i32, i32, i32
  }
  func.func @transform_1(%arg0: i32) -> (i32, i32) {
    %c0_i32 = arith.constant 0 : i32
    %c0_i32_0 = arith.constant 0 : i32
    %c0_i32_1 = arith.constant 0 : i32
    return %c0_i32, %c0_i32_0 : i32, i32
  }
  func.func @transform_2(%arg0: i32) -> (i32, i32) {
    %c0_i32 = arith.constant 0 : i32
    %c0_i32_0 = arith.constant 0 : i32
    %c0_i32_1 = arith.constant 0 : i32
    return %c0_i32, %c0_i32_0 : i32, i32
  }
  func.func @transform_3(%arg0: i32) -> (i32, i32) {
    %c0_i32 = arith.constant 0 : i32
    %c0_i32_0 = arith.constant 0 : i32
    %c0_i32_1 = arith.constant 0 : i32
    return %c0_i32, %c0_i32_0 : i32, i32
  }
  func.func @transform_4(%arg0: i32) -> (i32, i32) {
    %c0_i32 = arith.constant 0 : i32
    %c0_i32_0 = arith.constant 0 : i32
    %c0_i32_1 = arith.constant 0 : i32
    return %c0_i32, %c0_i32_0 : i32, i32
  }
  func.func @transform_5(%arg0: i32) -> (i32, i32) {
    %c0_i32 = arith.constant 0 : i32
    %c0_i32_0 = arith.constant 0 : i32
    %c0_i32_1 = arith.constant 0 : i32
    return %c0_i32, %c0_i32_0 : i32, i32
  }
  func.func @transform_6(%arg0: i32) -> (i32, i32, i32) {
    %c0_i32 = arith.constant 0 : i32
    %c0_i32_0 = arith.constant 0 : i32
    %c0_i32_1 = arith.constant 0 : i32
    return %arg0, %c0_i32, %c0_i32_0 : i32, i32, i32
  }
}

</mosaic_0001>

<bundles_post_ra>
// kernel: tpu_custom_call.1
= control target key start
LH: loop header
LB: loop body
LE: loop exit
PB: predicated region body
PF: predicated region fallthrough
CT: control target
= control target key end

     0   :  { %11 = vsyncpa [#allocation3], 0  ;;  %s1193_s0 = inlined_call_operand.hbm [shape: f32[2,4,256], index: 0, kind: input, shape index: {}]   ;;  %s1194_s1 = inlined_call_operand.hbm [shape: f32[4,4], index: 1, kind: input, shape index: {}]   ;;  %s1195_s2 = inlined_call_operand.vmem [shape: f32[4,1], index: 2, kind: input, shape index: {}]   ;;  %s1196_s3 = inlined_call_operand.hbm [shape: f32[4,9], index: 3, kind: input, shape index: {}]   ;;  %s1197_s4 = inlined_call_operand.vmem [shape: f32[4,1], index: 4, kind: input, shape index: {}]   ;;  %s1198_s5 = inlined_call_operand.vmem [shape: f32[4,256], index: 5, kind: input, shape index: {}]   ;;  %s1199_s6 = inlined_call_operand.hbm [shape: f32[2,8,256], index: 6, kind: output, shape index: {}]  }
   0x1   :  { %13 = vsyncpa [#allocation3 + $0x1], 0 }
   0x2   :  { %14 = vsyncpa [#allocation6], 0 }
   0x3   :  { %15 = vsyncpa [#allocation4], 0 }
   0x4   :  { %17 = vsyncpa [#allocation4 + $0x1], 0  ;;  %s980_s21 = smov 0   ;;  %s982_s22 = smov 0  }
   0x5   :  { %s984_s23 = smov 0   ;;  %s986_s24 = smov 0  }
   0x6 LB: > { %s1001_s25 = sadd.s32 4294967295, %s928_s24   ;;  %s649_s26 = sadd.s32 4294967294, %s928_s24   ;;  %s928_s24 = sphi %s986_s24, %s1209_s24   ;;  %s924_s23 = sphi %s984_s23, %s1208_s23   ;;  %s920_s22 = sphi %s982_s22, %s1207_s22   ;;  %s916_s21 = sphi %s980_s21, %s1206_s21  }
   0x7   : > { %p43_p0 = scmp.ne.s32.totalorder %s920_s22, %s916_s21  ;;  %p44_p1 = scmp.eq.s32.totalorder %s1001_s25, 0 }
   0x8   : > { %p172_p2 = scmp.eq.s32.totalorder %s1001_s25, 1  ;;  %p178_p3 = scmp.eq.s32.totalorder %s649_s26, 1 }
   0x9   : > { %p1010_p4 = por %p44_p1, %p43_p0  ;;  %p650_p5 = scmp.ge.s32.totalorder %s928_s24, 1 }
   0xa   : > { %p1015_p6 = por %p178_p3, %p43_p0  ;;  %p185_p7 = scmp.lt.s32.totalorder %s928_s24, 3 }
   0xb   : > { %s197_s7 = sshll.u32 %s1194_s1, 4  ;;  %s930_s9 = smov [#allocation5]   ;;  %s198_s7 = int_to_ptr.hbm [resolvable:$true] %s197_s7 }
   0xc   : > { %p1023_p8 = pnand %p650_p5, %p185_p7  ;;  %s199_s10 = sshll.u32 %s930_s9, 4  ;;  %s200_s10 = int_to_ptr.vmem [resolvable:$true] %s199_s10 }
   0xd   : > { %s212_s13 = sshll.u32 %s1196_s3, 4  ;;  %s931_s14 = smov [#allocation7]   ;;  %s213_s13 = int_to_ptr.hbm [resolvable:$true] %s212_s13 }
   0xe   : > { %p688_p10 = pneg %p1023_p8  ;;  %s214_s15 = sshll.u32 %s931_s14, 4  ;;  %s215_s15 = int_to_ptr.vmem [resolvable:$true] %s214_s15 }
   0xf   : > { %s1036_s16 = sadd.s32 1, %s928_s24   ;;  %s30_s17 = sadd.s32 1, %s924_s23 }
  0x10   : > { %p689_p11 = pnand %p688_p10, %p44_p1  ;;  %s27_s18 = ssub.s32 %s928_s24, %s1036_s16 }
  0x11   : > { %p37_p12 = scmp.ne.s32.totalorder %s924_s23, %s920_s22  ;;  %p28_p13 = scmp.eq.s32.totalorder %s27_s18, 0 }
  0x12   : > { %691 = dma.hbm_to_vmem [thread:$0]  (!%p689_p11), %s198_s7, 64, %s200_s10, [#allocation6]  }
  0x13   : > { %694 = dma.hbm_to_vmem [thread:$0]  (!%p689_p11), %s213_s13, 64, %s215_s15, [#allocation6]  }
  0x14   : > { %p38_p0 = scmp.eq.s32.totalorder %s928_s24, 0  ;;  %p1046_p3 = por %p172_p2, %p37_p12 }
  0x15   : > { %p705_p5 = scmp.lt.s32.totalorder %s928_s24, 2  ;;  %s231_s26 = sand.u32 1, %s924_s23  }
  0x16   : > { %s1052_s20 = scalar_select %p28_p13, %s924_s23, %s30_s17  }
  0x17   : > { %p39_p7 = por %p38_p0, %p37_p12  ;;  %s654_s29 = sshll.u32 %s231_s26, 3 }
  0x18   : > { %s674_s30 = sshll.u32 %s928_s24, 3  ;;  %s235_s11 = scalar_lea.vmem [#allocation2], %s654_s29 }
  0x19   : > { %s240_s10 = scalar_lea.hbm %s1193_s0, %s674_s30  ;;  %s244_s12 = sshll.u32 %s235_s11, 4  ;;  %s245_s12 = int_to_ptr.vmem [resolvable:$true] %s244_s12 }
  0x1a   : > { %s242_s13 = sshll.u32 %s240_s10, 4  ;;  %p1059_p2 = pnand %p705_p5, %p39_p7  ;;  %s243_s13 = int_to_ptr.hbm [resolvable:$true] %s242_s13 }
  0x1b   : > { %s232_s15 = scalar_lea.sflag [#allocation3], %s231_s26  ;;  %s828_s17 = sshra.s32 %s243_s13, 4  ;;  %s829_s17 = int_to_ptr.hbm [resolvable:$true] %s828_s17 }
  0x1c   : > { %s830_s18 = scalar_lea.hbm %s829_s17, 8  ;;  %p832_p11 = pneg %p1059_p2 }
  0x1d   : > { %p831_p10 = scmp.ne.s32.totalorder %s829_s17, %s830_s18  ;;  %s835_s7 = scalar_lea.hbm %s1193_s0, 16 }
  0x1e   : > { %p836_p0 = scmp.lt.s32.totalorder %s829_s17, %s1193_s0  ;;  %p837_p5 = scmp.lt.s32.totalorder %s835_s7, %s830_s18 }
  0x1f   : > { %p833_p12 = pnand %p832_p11, %p831_p10 }
  0x20   : > { %p838_p7 = por %p837_p5, %p836_p0 }
  0x21   : > { %p834_p13 = pneg %p833_p12 }
  0x23   : > { %p839_p9 = pnand %p838_p7, %p834_p13 }
  0x25   : > { %842 = shalt.err (!%p839_p9)
}
  0x26   : > { %698 = dma.hbm_to_vmem [thread:$0]  (!%p1059_p2), %s243_s13, 128, %s245_s12, %s232_s15  }
  0x27   : > { %253 = sbr.rel (%p1023_p8) target bundleno = 463 (0x1cf), region = 44  ;;  %s1076_s26 = sand.u32 (!%p1023_p8), 1, %s920_s22  }
  0x28   : > { %s658_s11 = sshll.u32 (!%p1023_p8), %s1076_s26, 3  ;;  %s256_s30 = scalar_lea.sflag (!%p1023_p8), [#allocation3], %s1076_s26 }
  0x29   : > { %s259_s29 = scalar_lea.vmem (!%p1023_p8), [#allocation2], %s658_s11 }
  0x2c   : > { %903 = dma.done.wait (%p1010_p4), %s256_s30, 128  }
  0x2d   : > { %905 = vsyncadd (%p1010_p4), %s256_s30, 4294967168 }
  0x2e   : > { %907 = dma.done.wait (%p44_p1), [#allocation6], 128  }
  0x2f   : > { %909 = vsyncadd (%p44_p1), [#allocation6], 4294967168  ;;  %v932_v0 = vmov 0   ;;  %v933_v1 = vmov 3   ;;  %v934_v2 = vmov 5   ;;  %v310_v3 = vld [vmem:[%s259_s29] sm:$0xff]  ;;  %v375_v23 = vlaneseq }
  0x30   : > { %756 = vset.pattern.permute.xlu0 %v932_v0  ;;  %757 = vset.pattern.permute.xlu2 %v933_v1  ;;  %v300_v4 = vld [vmem:[%s1195_s2] sm:$0xf]  ;;  %317 = vst [vmem:[#allocation1] ss:$2 sm:$0xff] %v310_v3  ;;  %v1092_v5 = vld [vmem:[#allocation7] sm:$0xf] }
  0x31   : > { %759 = vset.pattern.permute.xlu1 %v934_v2  ;;  %313 = vperm.xlu0 %756, %v300_v4   ;;  %vm324_vm0 = vcmask 1043456   ;;  %v299_v6 = vld [vmem:[#allocation5] sm:$0xf]  ;;  %vm320_vm1 = vcmask 31744   ;;  %v935_v9 = vmov 4   ;;  %v936_v10 = vmov 1  }
  0x32   : > { %403 = vperm.xlu2 %757, %v1092_v5   ;;  %417 = vperm.xlu1 %759, %v1092_v5   ;;  %v937_v11 = vmov 2   ;;  %v938_v12 = vmov 6   ;;  %s939_s27 = smov 127   ;;  %s940_s13 = smov 1   ;;  %v941_v20 = vmov 7   ;;  %v1122_v25 = vand.u32 127, %v375_v23 }
  0x33   : > { %s942_s14 = smov 16   ;;  %s943_s15 = smov 112   ;;  %v944_v26 = vmov 8   ;;  %v303_v27 = vld [vmem:[%s1198_s5] ss:$4 sm:$0x3] }
  0x34   : > { %vm377_vm2 = vcmp.lt.s32.totalorder %v1122_v25, 1  ;;  %v381_v29 = vperm.slane %v303_v27, 0  ;;  %v382_v30 = vperm.slane %v303_v27, 1  ;;  %v662_v37 = vld [vmem:[%s1198_s5 + $0x1] ss:$4 sm:$0x3] }
  0x35   : > { %vm391_vm3 = vcmp.lt.s32.totalorder %v1122_v25, 127  ;;  %v395_v38 = vperm.slane %v662_v37, 0  ;;  %v396_v39 = vperm.slane %v662_v37, 1  ;;  %v302_v56 = vld [vmem:[%s1197_s4] sm:$0xf]  ;;  %vm428_vm4 = vcmp.lt.s32.totalorder %v1122_v25, 16 }
  0x36   : > { %vm469_vm5 = vcmp.lt.s32.totalorder %v1122_v25, 112  ;;  %s878_s8 = scalar_lea.hbm %s1199_s6, 32 }
  0x37   : > { %v318_v7 = vld.sshfl [vmem:[#allocation1] sm:$0xff pattern:$0x75316420]  ;;  %v319_v8 = vld.sshfl [vmem:[#allocation1 + $0x8] sm:$0xff pattern:$0x75316420] }
  0x38   : > { %665 = vmatpush.msk.msra.mxu0 %vm324_vm0, %v318_v7  ;;  %667 = vmatpush.msk.msra.mxu1 %vm324_vm0, %v319_v8 }
  0x39   : > { %666 = vmatmul.msk.f32.vlgmr.msra.gmra.mxu0 %vm320_vm1, %v299_v6  ;;  %668 = vmatmul.msk.f32.vlgmr.msra.gmra.mxu1 %vm320_vm1, %v299_v6 }
  0x3a   : > { %758 = vset.pattern.permute.xlu0 %v935_v9  ;;  %760 = vset.pattern.permute.xlu2 %v932_v0 }
  0x3b   : > { %409 = vperm.xlu0 %758, %v1092_v5   ;;  %432 = vperm.xlu2 %760, %v1092_v5  }
  0x3c   : > { %763 = vset.pattern.permute.xlu1 %v938_v12 }
  0x43   : > { %761 = vset.pattern.permute.xlu2 %v936_v10  ;;  %762 = vset.pattern.permute.xlu0 %v937_v11 }
  0x8c   : > { %v404_v21 = vpop.permute.xlu2 %403 }
  0x95   : > { %v433_v28 = vpop.permute.xlu2 %432 }
  0xa3   : > { %v314_v13 = vpop.permute.xlu0 %313 }
  0xa4   : > { %v418_v22 = vpop.permute.xlu1 %417 }
  0xad   : > { %v410_v24 = vpop.permute.xlu0 %409 }
  0xb6   : > { %v346_v14 = vpop.f32.mrf.mxu0  ;;  %v366_v15 = vpop.f32.mrf.mxu1 }
  0xb7   : > { %v347_v16 = vadd.f32 %v346_v14, %v314_v13  ;;  %v367_v17 = vadd.f32 %v366_v15, %v314_v13 }
  0xb9   : > { %v1101_v18 = vmax.f32 %v347_v16, 0.0  ;;  %v1103_v19 = vmax.f32 %v367_v17, 0.0 }
  0xbb   : > { %389 = vrot.lane.b32.xlu2 %v1103_v19, %s939_s27  ;;  %373 = vrot.lane.b32.xlu1 %v1103_v19, %s940_s13  ;;  %v412_v46 = vmul.f32 %v410_v24, %v1101_v18  ;;  %v413_v47 = vmul.f32 %v410_v24, %v1103_v19 }
  0xbc   : > { %371 = vrot.lane.b32.xlu0 %v1101_v18, %s940_s13  ;;  %s675_s13 = sshll.u32 %s1001_s25, 4  ;;  %s544_s25 = scalar_lea.sflag [#allocation4], %s1076_s26 }
  0xbd   : > { %s555_s17 = scalar_lea.hbm %s1199_s6, %s675_s13 }
  0xbe   : > { %s559_s9 = sshll.u32 %s555_s17, 4  ;;  %s560_s9 = int_to_ptr.hbm [resolvable:$true] %s559_s9 }
  0xbf   : > { %s872_s10 = sshra.s32 %s560_s9, 4  ;;  %s873_s10 = int_to_ptr.hbm [resolvable:$true] %s872_s10 }
  0xc0   : > { %s874_s11 = scalar_lea.hbm %s873_s10, 16  ;;  %p879_p9 = scmp.lt.s32.totalorder %s873_s10, %s1199_s6 }
  0xc1   : > { %p875_p1 = scmp.ne.s32.totalorder %s873_s10, %s874_s11  ;;  %p880_p2 = scmp.lt.s32.totalorder %s878_s8, %s874_s11 }
  0xc3   : > { %444 = vperm.xlu2 %761, %v1092_v5   ;;  %387 = vrot.lane.b32.xlu1 %v1101_v18, %s939_s27  ;;  %s661_s27 = sshll.u32 %s1076_s26, 4  ;;  %p876_p4 = pnand %p875_p1, %p1046_p3 }
  0xc4   : > { %458 = vperm.xlu0 %762, %v1092_v5   ;;  %s298_s18 = scalar_lea.vmem [#allocation8], %s661_s27  ;;  %p881_p10 = por %p880_p2, %p879_p9 }
  0xc5   : > { %s557_s7 = sshll.u32 %s298_s18, 4  ;;  %p877_p8 = pneg %p876_p4  ;;  %s558_s7 = int_to_ptr.vmem [resolvable:$true] %s557_s7 }
  0xc7   : > { %p882_p11 = pnand %p881_p10, %p877_p8 }
  0xcb   : > { %764 = vset.pattern.permute.xlu2 %v941_v20  ;;  %473 = vperm.xlu1 %763, %v1092_v5  }
  0xcc   : > { %437 = vrot.lane.b32.xlu0 %v1101_v18, %s942_s14  ;;  %485 = vperm.xlu2 %764, %v1092_v5  }
  0xcd   : > { %765 = vset.pattern.permute.xlu0 %v944_v26 }
  0xd3   : > { %439 = vrot.lane.b32.xlu1 %v1103_v19, %s942_s14 }
  0xd4   : > { %480 = vrot.lane.b32.xlu2 %v1103_v19, %s943_s15  ;;  %766 = vset.pattern.permute.xlu1 %v932_v0 }
  0xdb   : > { %478 = vrot.lane.b32.xlu1 %v1101_v18, %s943_s15 }
 0x115   : > { %v390_v40 = vpop.permute.xlu2 %389 }
 0x11d   : > { %v445_v58 = vpop.permute.xlu2 %444 }
 0x126   : > { %v486_v60 = vpop.permute.xlu2 %485 }
 0x12d   : > { %v374_v31 = vpop.permute.xlu1 %373 }
 0x12e   : > { %v372_v32 = vpop.permute.xlu0 %371  ;;  %v481_v63 = vpop.permute.xlu2 %480 }
 0x12f   : > { %v378_v33 = vsel %vm377_vm2, %v372_v32, %v374_v31  ;;  %v379_v34 = vsel %vm377_vm2, %v374_v31, %v372_v32 }
 0x130   : > { %v385_v35 = vmul.f32 %v381_v29, %v379_v34  ;;  %v386_v36 = vmul.f32 %v382_v30, %v378_v33 }
 0x132   : > { %424 = vrot.lane.b32.xlu2 %v385_v35, %s942_s14  ;;  %426 = vrot.lane.b32.xlu1 %v386_v36, %s942_s14  ;;  %v406_v41 = vmul.f32 %v404_v21, %v385_v35  ;;  %v407_v42 = vmul.f32 %v404_v21, %v386_v36 }
 0x134   : > { %v414_v52 = vadd.f32 %v412_v46, %v406_v41  ;;  %v415_v53 = vadd.f32 %v413_v47, %v407_v42 }
 0x135   : > { %v388_v43 = vpop.permute.xlu1 %387 }
 0x136   : > { %v392_v44 = vsel %vm391_vm3, %v388_v43, %v390_v40  ;;  %v393_v45 = vsel %vm391_vm3, %v390_v40, %v388_v43  ;;  %v459_v61 = vpop.permute.xlu0 %458  ;;  %v664_v40 = vld [vmem:[%s1198_s5 + $0x3] ss:$4 sm:$0x3] }
 0x137   : > { %v399_v48 = vmul.f32 %v395_v38, %v392_v44  ;;  %v400_v49 = vmul.f32 %v396_v39, %v393_v45  ;;  %v516_v46 = vperm.slane %v664_v40, 0  ;;  %v517_v47 = vperm.slane %v664_v40, 1 }
 0x139   : > { %v420_v50 = vmul.f32 %v418_v22, %v399_v48  ;;  %v421_v51 = vmul.f32 %v418_v22, %v400_v49  ;;  %451 = vrot.lane.b32.xlu0 %v399_v48, %s942_s14 }
 0x13a   : > { %465 = vrot.lane.b32.xlu2 %v385_v35, %s943_s15  ;;  %453 = vrot.lane.b32.xlu1 %v400_v49, %s942_s14 }
 0x13b   : > { %v422_v54 = vadd.f32 %v420_v50, %v414_v52  ;;  %v423_v55 = vadd.f32 %v421_v51, %v415_v53 }
 0x13d   : > { %v474_v57 = vpop.permute.xlu1 %473 }
 0x13e   : > { %v438_v1 = vpop.permute.xlu0 %437 }
 0x141   : > { %467 = vrot.lane.b32.xlu0 %v386_v36, %s943_s15 }
 0x142   : > { %494 = vrot.lane.b32.xlu2 %v400_v49, %s943_s15  ;;  %492 = vrot.lane.b32.xlu1 %v399_v48, %s943_s15 }
 0x145   : > { %v440_v59 = vpop.permute.xlu1 %439 }
 0x146   : > { %v441_v7 = vsel %vm428_vm4, %v438_v1, %v440_v59  ;;  %v442_v8 = vsel %vm428_vm4, %v440_v59, %v438_v1 }
 0x147   : > { %v447_v11 = vmul.f32 %v445_v58, %v442_v8  ;;  %v448_v12 = vmul.f32 %v445_v58, %v441_v7 }
 0x149   : > { %499 = vperm.xlu0 %765, %v1092_v5  }
 0x14a   : > { %526 = vperm.xlu1 %766, %v302_v56  }
 0x14d   : > { %v479_v62 = vpop.permute.xlu1 %478 }
 0x14e   : > { %v482_v35 = vsel %vm469_vm5, %v479_v62, %v481_v63  ;;  %v483_v36 = vsel %vm469_vm5, %v481_v63, %v479_v62 }
 0x14f   : > { %v488_v41 = vmul.f32 %v486_v60, %v482_v35  ;;  %v489_v42 = vmul.f32 %v486_v60, %v483_v36 }
 0x151   : > { %767 = vset.pattern.permute.xlu0 %v932_v0  ;;  %v663_v0 = vld [vmem:[%s1198_s5 + $0x2] ss:$4 sm:$0x3] }
 0x152   : > { %v507_v16 = vperm.slane %v663_v0, 0  ;;  %v508_v17 = vperm.slane %v663_v0, 1 }
 0x18c   : > { %v425_v3 = vpop.permute.xlu2 %424 }
 0x194   : > { %v466_v24 = vpop.permute.xlu2 %465 }
 0x19c   : > { %v495_v43 = vpop.permute.xlu2 %494 }
 0x1a4   : > { %v427_v2 = vpop.permute.xlu1 %426 }
 0x1a5   : > { %v429_v4 = vsel %vm428_vm4, %v425_v3, %v427_v2  ;;  %v430_v6 = vsel %vm428_vm4, %v427_v2, %v425_v3 }
 0x1a6   : > { %v435_v5 = vmul.f32 %v433_v28, %v430_v6  ;;  %v436_v9 = vmul.f32 %v433_v28, %v429_v4 }
 0x1a8   : > { %v449_v20 = vadd.f32 %v447_v11, %v435_v5  ;;  %v450_v21 = vadd.f32 %v448_v12, %v436_v9 }
 0x1ab   : > { %v452_v10 = vpop.permute.xlu0 %451 }
 0x1ac   : > { %v454_v13 = vpop.permute.xlu1 %453 }
 0x1ad   : > { %v455_v14 = vsel %vm428_vm4, %v452_v10, %v454_v13  ;;  %v456_v15 = vsel %vm428_vm4, %v454_v13, %v452_v10 }
 0x1ae   : > { %v461_v22 = vmul.f32 %v459_v61, %v456_v15  ;;  %v462_v23 = vmul.f32 %v459_v61, %v455_v14 }
 0x1b0   : > { %v463_v26 = vadd.f32 %v461_v22, %v449_v20  ;;  %v464_v27 = vadd.f32 %v462_v23, %v450_v21 }
 0x1b2   : > { %v511_v28 = vmul.f32 %v507_v16, %v463_v26  ;;  %v512_v29 = vmul.f32 %v508_v17, %v464_v27 }
 0x1b3   : > { %v468_v30 = vpop.permute.xlu0 %467 }
 0x1b4   : > { %v513_v31 = vadd.f32 %v511_v28, %v422_v54  ;;  %v514_v32 = vadd.f32 %v512_v29, %v423_v55  ;;  %v470_v33 = vsel %vm469_vm5, %v466_v24, %v468_v30  ;;  %v471_v34 = vsel %vm469_vm5, %v468_v30, %v466_v24  ;;  %v493_v37 = vpop.permute.xlu1 %492 }
 0x1b5   : > { %v476_v38 = vmul.f32 %v474_v57, %v470_v33  ;;  %v477_v39 = vmul.f32 %v474_v57, %v471_v34  ;;  %v496_v44 = vsel %vm469_vm5, %v493_v37, %v495_v43  ;;  %v497_v25 = vsel %vm469_vm5, %v495_v43, %v493_v37 }
 0x1b7   : > { %v490_v48 = vadd.f32 %v488_v41, %v476_v38  ;;  %v491_v49 = vadd.f32 %v489_v42, %v477_v39 }
 0x1bb   : > { %v500_v45 = vpop.permute.xlu0 %499 }
 0x1bc   : > { %v502_v50 = vmul.f32 %v500_v45, %v496_v44  ;;  %v503_v51 = vmul.f32 %v500_v45, %v497_v25  ;;  %v527_v56 = vpop.permute.xlu1 %526 }
 0x1be   : > { %v504_v52 = vadd.f32 %v502_v50, %v490_v48  ;;  %v505_v53 = vadd.f32 %v503_v51, %v491_v49 }
 0x1c0   : > { %v520_v54 = vmul.f32 %v516_v46, %v504_v52  ;;  %v521_v55 = vmul.f32 %v517_v47, %v505_v53 }
 0x1c2   : > { %v522_v57 = vadd.f32 %v520_v54, %v513_v31  ;;  %v523_v58 = vadd.f32 %v521_v55, %v514_v32 }
 0x1c4   : > { %v529_v59 = vadd.f32 %v527_v56, %v522_v57  ;;  %v530_v60 = vadd.f32 %v527_v56, %v523_v58 }
 0x1c6   : > { %v531_v61 = vmax.f32 %v529_v59, 0.0  ;;  %v532_v62 = vmax.f32 %v530_v60, 0.0 }
 0x1c8   : > { %v535_v63 = vrot.slane %v531_v61, 4  ;;  %v536_v1 = vrot.slane %v532_v62, 4 }
 0x1ca   : > { %v539_v2 = vsel %vm324_vm0, %v1101_v18, %v535_v63  ;;  %v540_v3 = vsel %vm324_vm0, %v1103_v19, %v536_v1 }
 0x1cb   : > { %541 = vst [vmem:[%s298_s18] sm:$0xff] %v539_v2 }
 0x1cc   : > { %542 = vst [vmem:[%s298_s18 + $0x8] sm:$0xff] %v540_v3 }
 0x1cd   : > { %885 = shalt.err (!%p882_p11)
}
 0x1ce   : > { %686 = dma.vmem_to_hbm [thread:$0]  (%p1046_p3), %s558_s7, 256, %s560_s9, %s544_s25  }
 0x1cf PF: > { %s571_s26 = sand.u32 1, %s916_s21   ;;  %p1205_p12 = scmp.ge.s32.totalorder %s928_s24, 2 }
 0x1d0   : > { %s572_s13 = scalar_lea.sflag [#allocation4], %s571_s26 }
 0x1d1   : > { %p700_p13 = pnand %p1205_p12, %p1015_p6 }
 0x1d3   : > { %p701_p0 = pneg %p700_p13 }
 0x1d5   : > { %911 = dma.done.wait (%p701_p0), %s572_s13, 256  }
 0x1d6   : > { %913 = vsyncadd (%p701_p0), %s572_s13, 4294967040  ;;  %p20_p5 = scmp.ge.s32.totalorder %s1036_s16, 4   ;;  %s1206_s21 = smov %s920_s22 }
 0x1d7   : > { %s1207_s22 = smov %s924_s23  ;;  %s1208_s23 = smov %s1052_s20 }
 0x1d8   : > { %s1209_s24 = smov %s1036_s16  ;;  %22 = sbr.rel (!%p20_p5) target bundleno = 6 (0x6), region = 100 }
 0x1dd   :  { %578 = vsyncpa [#allocation3], 1 }
 0x1de   :  { %580 = vsyncpa [#allocation3 + $0x1], 1 }
 0x1df   :  { %581 = vsyncpa [#allocation6], 1 }
 0x1e0   :  { %582 = vsyncpa [#allocation4], 1 }
 0x1e1   :  { %584 = vsyncpa [#allocation4 + $0x1], 1 }

</bundles_post_ra>
